<compile_context>
chip_gen: v5e
topology: v5e:2x2
jax: 0.10.0
libtpu: 0.0.40
codegen_flags: <defaults>
</compile_context>

<pallas_src>
import math
import functools

import jax
import jax.numpy as jnp
from jax import lax
from jax.experimental import pallas as pl
from jax.experimental.pallas import tpu as pltpu

LRELU_SLOPE = 0.1

# --------------------------------------------------------------------------
# Hyper-parameters (small but faithful; inter/hidden channels = 192 is forced
# by the hard-coded 192-split in SynthesizerTrn.forward).
# --------------------------------------------------------------------------
HPS = dict(
    n_vocab=40,
    spec_channels=20,
    segment_size=4,
    inter_channels=192,
    hidden_channels=192,
    phoneme_encoder=dict(out_channels=192, hidden_channels=192, filter_channels=256,
                         n_heads=2, n_layers=1, kernel_size=3, p_dropout=0.0),
    decoder=dict(initial_channel=192, resblock='2', resblock_kernel_sizes=[3],
                 resblock_dilation_sizes=[[1, 3]], upsample_rates=[2, 2],
                 upsample_initial_channel=64, upsample_kernel_sizes=[4, 4]),
    posterior_encoder=dict(out_channels=192, hidden_channels=192, kernel_size=5,
                           dilation_rate=1, n_layers=2),
    flow=dict(channels=192, hidden_channels=192, kernel_size=5, dilation_rate=1,
              n_layers=2, n_flows=2),
    duration_predictor=dict(in_channels=192, filter_channels=256, kernel_size=3,
                            p_dropout=0.5),
    learnable_upsampling=dict(d_predictor=192, kernel_size=3, dropout=0.0,
                              conv_output_size=8, dim_w=4, dim_c=2, max_seq_len=1000),
)


# --------------------------------------------------------------------------
# Small helpers
# --------------------------------------------------------------------------
def _round_up(v, m):
    return (v + m - 1) // m * m


def _pad128(n):
    return _round_up(n, 128)


def _apply_act(acc, act):
    if act == "relu":
        return jnp.maximum(acc, 0.0)
    if act == "silu":
        # divide goes to the EUP slot (approx reciprocal), off the VALU critical path
        return acc * pl.reciprocal(1.0 + jnp.exp(-acc), approx=True)
    if act == "tanh":
        return jnp.tanh(acc)
    if act == "lrelu":
        return jnp.where(acc >= 0.0, acc, LRELU_SLOPE * acc)
    return acc


# --------------------------------------------------------------------------
# Pallas kernel 1: fused matmul + bias + activation (1x1 convs, linears, QKV)
# --------------------------------------------------------------------------
def _mm_kernel(x_ref, w_ref, b_ref, o_ref, *, act):
    acc = jnp.dot(x_ref[...], w_ref[...], preferred_element_type=jnp.float32)
    o_ref[...] = _apply_act(acc + b_ref[...], act)


def matmul_bias_act(x, wm, bias2d, act="none"):
    """x:(M,K) float; wm:(K,Np) pre-packed bf16; bias2d:(1,Np) f32 -> (M,Np) f32."""
    M, K = x.shape
    Np = wm.shape[1]
    TM = min(256, _round_up(M, 8))
    return pl.pallas_call(
        functools.partial(_mm_kernel, act=act),
        out_shape=jax.ShapeDtypeStruct((M, Np), jnp.float32),
        grid=(pl.cdiv(M, TM),),
        in_specs=[
            pl.BlockSpec((TM, K), lambda i: (i, 0)),
            pl.BlockSpec((K, Np), lambda i: (0, 0)),     # grid-invariant: DMA'd once
            pl.BlockSpec((1, Np), lambda i: (0, 0)),
        ],
        out_specs=pl.BlockSpec((TM, Np), lambda i: (i, 0)),
        compiler_params=pltpu.CompilerParams(dimension_semantics=("parallel",)),
    )(x.astype(jnp.bfloat16), wm, bias2d)


# --------------------------------------------------------------------------
# Pallas kernel 2: tap-unrolled Conv1d (im2col done in VMEM, per-tap MXU dots)
# --------------------------------------------------------------------------
def _conv_tap_kernel(x_ref, w_ref, b_ref, o_ref, *, cin, tap_starts, act):
    t_out = o_ref.shape[1]
    acc = None
    for i, st in enumerate(tap_starts):          # static unrolled tap loop
        d = jnp.dot(x_ref[0, st:st + t_out, :],
                    w_ref[i * cin:(i + 1) * cin, :],
                    preferred_element_type=jnp.float32)
        acc = d if acc is None else acc + d
    o_ref[0] = _apply_act(acc + b_ref[...], act)


def conv_taps_pallas(x_pad, wm, bias2d, tap_starts, t_out, act):
    """x_pad:(B,Tp,Cin) float; wm:(n_taps*Cin, Np) bf16; bias2d:(1,Np) f32."""
    B, Tp, cin = x_pad.shape
    Np = wm.shape[1]
    assert wm.shape[0] == len(tap_starts) * cin
    return pl.pallas_call(
        functools.partial(_conv_tap_kernel, cin=cin,
                          tap_starts=tuple(int(s) for s in tap_starts), act=act),
        out_shape=jax.ShapeDtypeStruct((B, t_out, Np), jnp.float32),
        grid=(B,),
        in_specs=[
            pl.BlockSpec((1, Tp, cin), lambda b: (b, 0, 0)),   # x fetched once per batch
            pl.BlockSpec(wm.shape, lambda b: (0, 0)),          # grid-invariant weights
            pl.BlockSpec((1, Np), lambda b: (0, 0)),
        ],
        out_specs=pl.BlockSpec((1, t_out, Np), lambda b: (b, 0, 0)),
        compiler_params=pltpu.CompilerParams(dimension_semantics=("parallel",)),
    )(x_pad.astype(jnp.bfloat16), wm, bias2d)


# --------------------------------------------------------------------------
# Weight pre-packing (done ONCE at init)
# --------------------------------------------------------------------------
def pack_matmul(w_oi, b):
    """torch Linear / fused 1x1 weight (out,in) -> bf16 (in, Np) + unpadded bias."""
    out_dim, in_dim = w_oi.shape
    npd = _pad128(out_dim)
    wm = jnp.zeros((in_dim, npd), jnp.float32).at[:, :out_dim].set(jnp.transpose(w_oi))
    return {"wm": wm.astype(jnp.bfloat16), "b": b.astype(jnp.float32)}


def pack_conv(w, b):
    """torch Conv1d weight (Cout,Cin,K) -> tap-major bf16 (K*Cin, Np) + unpadded bias."""
    cout, cin, k = w.shape
    npd = _pad128(cout)
    wm = jnp.transpose(w, (2, 1, 0)).reshape(k * cin, cout)
    wmp = jnp.zeros((k * cin, npd), jnp.float32).at[:, :cout].set(wm)
    return {"wm": wmp.astype(jnp.bfloat16), "b": b.astype(jnp.float32)}


def _polyphase_geometry(K, stride, padding):
    assert K - 2 * padding == stride, "polyphase ConvTranspose requires K - 2*pad == stride"
    deltas = [-((k - padding) // stride) for k in range(K)]
    dmin, dmax = min(deltas), max(deltas)
    n_taps = dmax - dmin + 1
    pad_l, pad_r = max(0, -dmin), max(0, dmax)
    tap_starts = tuple(i + dmin + pad_l for i in range(n_taps))
    return dmin, n_taps, pad_l, pad_r, tap_starts


def pack_conv_transpose(w_t, b, stride, padding):
    """torch ConvTranspose1d weight (Cin,Cout,K) -> polyphase bf16 (n_taps*Cin, Np)."""
    cin, cout, K = w_t.shape
    dmin, n_taps, _, _, _ = _polyphase_geometry(K, stride, padding)
    ncols = stride * cout
    npd = _pad128(ncols)
    wm = jnp.zeros((n_taps * cin, npd), jnp.float32)
    for i in range(n_taps):
        delta = dmin + i
        for r in range(stride):
            k = padding + r - stride * delta
            if 0 <= k < K:
                wm = wm.at[i * cin:(i + 1) * cin, r * cout:(r + 1) * cout].set(w_t[:, :, k])
    bp = jnp.tile(b.astype(jnp.float32), stride)
    return {"wm": wm.astype(jnp.bfloat16), "b": bp}


# --------------------------------------------------------------------------
# Layer primitives built on the Pallas kernels (channels-last activations)
# --------------------------------------------------------------------------
def _bias2d(b, npad):
    return jnp.pad(b.astype(jnp.float32), (0, npad - b.shape[0])).reshape(1, npad)


def linear_packed(x, p, act="none"):
    shp = x.shape
    wm = p["wm"]
    n = p["b"].shape[0]
    y = matmul_bias_act(x.reshape(-1, shp[-1]), wm, _bias2d(p["b"], wm.shape[1]), act)
    if n != wm.shape[1]:
        y = y[:, :n]
    return y.reshape(shp[:-1] + (n,))


def conv1d_cl(x, p, *, padding=0, dilation=1, act="none"):
    """Stride-1 PyTorch-semantics Conv1d on channels-last x:(B,T,Cin), packed weights."""
    B, T, cin = x.shape
    wm = p["wm"]
    k = wm.shape[0] // cin
    if k == 1:
        return linear_packed(x, p, act=act)
    n = p["b"].shape[0]
    xp = jnp.pad(x, ((0, 0), (padding, padding), (0, 0))) if padding else x
    t_out = T + 2 * padding - dilation * (k - 1)
    tap_starts = [i * dilation for i in range(k)]
    y = conv_taps_pallas(xp, wm, _bias2d(p["b"], wm.shape[1]), tap_starts, t_out, act)
    return y[:, :, :n] if n != wm.shape[1] else y


def conv_transpose1d_cl(x, p, *, kernel_size, stride, padding, act="none"):
    """Polyphase (no zero-stuffing) ConvTranspose1d on channels-last x:(B,T,Cin)."""
    B, T, cin = x.shape
    _, n_taps, pad_l, pad_r, tap_starts = _polyphase_geometry(kernel_size, stride, padding)
    wm = p["wm"]
    ncols = p["b"].shape[0]                       # stride * cout
    cout = ncols // stride
    xp = jnp.pad(x, ((0, 0), (pad_l, pad_r), (0, 0)))
    y = conv_taps_pallas(xp, wm, _bias2d(p["b"], wm.shape[1]), tap_starts, T, act)
    if ncols != wm.shape[1]:
        y = y[:, :, :ncols]
    return y.reshape(B, T, stride, cout).reshape(B, T * stride, cout)


def conv1d_small(x, w, b=None, *, padding=0, dilation=1):
    """Plain-JAX conv for tiny output widths (kept off the padded MXU path)."""
    B, T, cin = x.shape
    cout, _, K = w.shape
    xp = jnp.pad(x, ((0, 0), (padding, padding), (0, 0))) if padding else x
    t_out = T + 2 * padding - dilation * (K - 1)
    y = jnp.zeros((B, t_out, cout), jnp.float32)
    for k in range(K):
        xk = lax.slice_in_dim(xp, k * dilation, k * dilation + t_out, axis=1)
        y = y + jnp.einsum("btc,oc->bto", xk, w[:, :, k])
    if b is not None:
        y = y + b
    return y


def linear_small(x, w, b, act="none"):
    y = jnp.einsum("...i,oi->...o", x, w) + b
    if act == "silu":
        y = y * jax.nn.sigmoid(y)
    return y


def leaky_relu(x, slope=LRELU_SLOPE):
    return jnp.where(x >= 0, x, slope * x)


def layer_norm(x, gamma, beta, eps=1e-5):
    m = jnp.mean(x, axis=-1, keepdims=True)
    v = jnp.mean((x - m) ** 2, axis=-1, keepdims=True)
    return (x - m) * lax.rsqrt(v + eps) * gamma + beta


def sequence_mask(lengths, max_len):
    return (jnp.arange(max_len)[None, :] < lengths[:, None]).astype(jnp.float32)


# --------------------------------------------------------------------------
# Parameter init (synthetic, deterministic; pre-packed for the Pallas kernels)
# --------------------------------------------------------------------------
class KeyGen:
    def __init__(self, key):
        self.key = key

    def __call__(self):
        self.key, sub = jax.random.split(self.key)
        return sub


def _rand_linear(kg, out_dim, in_dim):
    w = jax.random.normal(kg(), (out_dim, in_dim), jnp.float32) / math.sqrt(in_dim)
    return w, jnp.zeros((out_dim,), jnp.float32)


def _rand_conv(kg, out_ch, in_ch, k, zero=False):
    if zero:
        w = jnp.zeros((out_ch, in_ch, k), jnp.float32)
    else:
        w = jax.random.normal(kg(), (out_ch, in_ch, k), jnp.float32) / math.sqrt(in_ch * k)
    return w, jnp.zeros((out_ch,), jnp.float32)


def init_ln(dim):
    return {"g": jnp.ones((dim,), jnp.float32), "b": jnp.zeros((dim,), jnp.float32)}


def init_wn(kg, hidden, kernel, n_layers):
    return dict(
        inl=[pack_conv(*_rand_conv(kg, 2 * hidden, hidden, kernel)) for _ in range(n_layers)],
        rs=[pack_conv(*_rand_conv(kg, 2 * hidden if i < n_layers - 1 else hidden, hidden, 1))
            for i in range(n_layers)])


def init_params(key):
    kg = KeyGen(key)
    cfg = HPS
    H = cfg["hidden_channels"]
    pe = cfg["phoneme_encoder"]
    enc_p = dict(
        emb=jax.random.normal(kg(), (cfg["n_vocab"], H), jnp.float32) * H ** -0.5,
        layers=[dict(qkv=pack_matmul(*_rand_linear(kg, 3 * H, H)),      # fused Q/K/V
                     o=pack_matmul(*_rand_linear(kg, H, H)),
                     ln1=init_ln(H),
                     ffn1=pack_conv(*_rand_conv(kg, pe["filter_channels"], H, pe["kernel_size"])),
                     ffn2=pack_conv(*_rand_conv(kg, H, pe["filter_channels"], pe["kernel_size"])),
                     ln2=init_ln(H))
                for _ in range(pe["n_layers"])],
        proj=pack_conv(*_rand_conv(kg, pe["out_channels"] * 2, H, 1)))

    po = cfg["posterior_encoder"]
    enc_q = dict(pre=pack_conv(*_rand_conv(kg, po["hidden_channels"], cfg["spec_channels"], 1)),
                 enc=init_wn(kg, po["hidden_channels"], po["kernel_size"], po["n_layers"]),
                 proj=pack_conv(*_rand_conv(kg, po["out_channels"] * 2, po["hidden_channels"], 1)))

    fl = cfg["flow"]
    half = fl["channels"] // 2
    flow = dict(layers=[dict(pre=pack_conv(*_rand_conv(kg, fl["hidden_channels"], half, 1)),
                             enc=init_wn(kg, fl["hidden_channels"], fl["kernel_size"],
                                         fl["n_layers"]),
                             post=pack_conv(*_rand_conv(kg, half, fl["hidden_channels"], 1,
                                                        zero=True)))
                        for _ in range(fl["n_flows"])])

    dpc = cfg["duration_predictor"]
    F = dpc["filter_channels"]
    proj_w, proj_b = _rand_conv(kg, 1, F, 1)
    dp = dict(c1=pack_conv(*_rand_conv(kg, F, dpc["in_channels"], dpc["kernel_size"])),
              ln1=init_ln(F),
              c2=pack_conv(*_rand_conv(kg, F, F, dpc["kernel_size"])), ln2=init_ln(F),
              proj={"w": proj_w, "b": proj_b})               # N=1 head: plain-JAX path

    lu_cfg = cfg["learnable_upsampling"]
    D, CO = lu_cfg["d_predictor"], lu_cfg["conv_output_size"]
    dw, dc = lu_cfg["dim_w"], lu_cfg["dim_c"]

    def raw_lin(out_d, in_d):
        w_, b_ = _rand_linear(kg, out_d, in_d)
        return {"w": w_, "b": b_}

    lu = dict(conv_w=pack_conv(*_rand_conv(kg, CO, D, lu_cfg["kernel_size"])),
              swish_w=dict(l1=raw_lin(dw, CO + 2), l2=raw_lin(dw, dw)),
              linear_w=pack_matmul(*_rand_linear(kg, D, dw * D)),
              conv_c=pack_conv(*_rand_conv(kg, CO, D, lu_cfg["kernel_size"])),
              swish_c=dict(l1=raw_lin(dc, CO + 2), l2=raw_lin(dc, dc)),
              linear_einsum=raw_lin(D, dc * dw),             # K=8 contraction: plain-JAX path
              ln=init_ln(D),
              proj_o=pack_matmul(*_rand_linear(kg, 2 * D, D)))

    dec = cfg["decoder"]
    uic = dec["upsample_initial_channel"]
    gen = dict(pre=pack_conv(*_rand_conv(kg, uic, dec["initial_channel"], 7)), ups=[], res=[])
    for i, (u, k) in enumerate(zip(dec["upsample_rates"], dec["upsample_kernel_sizes"])):
        cin = uic // (2 ** i)
        cout = uic // (2 ** (i + 1))
        w_t = jax.random.normal(kg(), (cin, cout, k), jnp.float32) * 0.01
        gen["ups"].append(pack_conv_transpose(w_t, jnp.zeros((cout,), jnp.float32),
                                              stride=u, padding=(k - u) // 2))
        for ks_, ds_ in zip(dec["resblock_kernel_sizes"], dec["resblock_dilation_sizes"]):
            gen["res"].append(dict(convs=[pack_conv(*_rand_conv(kg, cout, cout, ks_))
                                          for _ in ds_]))
    ch_last = uic // (2 ** len(dec["upsample_rates"]))
    w_post, _ = _rand_conv(kg, 1, ch_last, 7)
    gen["post"] = {"w": w_post}                              # bias=False, N=1: plain-JAX path
    return dict(enc_p=enc_p, enc_q=enc_q, flow=flow, dp=dp, lu=lu, dec=gen)


# --------------------------------------------------------------------------
# Modules (forward)
# --------------------------------------------------------------------------
def mha_apply(p, x, n_heads, mask):
    B, T, C = x.shape
    hd = C // n_heads
    qkv = linear_packed(x, p["qkv"])                          # fused Q/K/V (one MXU call)
    q, k, v = jnp.split(qkv, 3, axis=-1)
    q = q.reshape(B, T, n_heads, hd).transpose(0, 2, 1, 3)
    k = k.reshape(B, T, n_heads, hd).transpose(0, 2, 1, 3)
    v = v.reshape(B, T, n_heads, hd).transpose(0, 2, 1, 3)
    scores = jnp.einsum("bhqd,bhkd->bhqk", q, k) / math.sqrt(hd)
    if mask is not None:
        scores = jnp.where(mask, scores, -1e4)
    attn = jax.nn.softmax(scores, axis=-1)
    out = jnp.einsum("bhqk,bhkd->bhqd", attn, v).transpose(0, 2, 1, 3).reshape(B, T, C)
    return linear_packed(out, p["o"])


def text_encoder_apply(p, x_ids, x_lengths, cfg):
    pe = cfg["phoneme_encoder"]
    H = cfg["hidden_channels"]
    x = jnp.take(p["emb"], x_ids, axis=0) * math.sqrt(H)      # (B,T,H)
    B, T, _ = x.shape
    x_mask = sequence_mask(x_lengths, T)[..., None]           # (B,T,1)
    m1 = x_mask[..., 0]
    attn_mask = (m1[:, None, :, None] * m1[:, None, None, :]) > 0
    x = x * x_mask
    for lp in p["layers"]:
        y = mha_apply(lp, x, pe["n_heads"], attn_mask)
        x = layer_norm(x + y, lp["ln1"]["g"], lp["ln1"]["b"])
        y = conv1d_cl(x * x_mask, lp["ffn1"], padding=pe["kernel_size"] // 2, act="relu")
        y = conv1d_cl(y * x_mask, lp["ffn2"], padding=pe["kernel_size"] // 2) * x_mask
        x = layer_norm(x + y, lp["ln2"]["g"], lp["ln2"]["b"])
    x = x * x_mask
    stats = conv1d_cl(x, p["proj"]) * x_mask
    m, logs = jnp.split(stats, 2, axis=-1)
    return x, m, logs, x_mask


def wn_apply(p, x, x_mask, hidden, kernel, dilation_rate, n_layers):
    out = jnp.zeros_like(x)
    for i in range(n_layers):
        dil = dilation_rate ** i
        pad = (kernel * dil - dil) // 2
        x_in = conv1d_cl(x, p["inl"][i], padding=pad, dilation=dil)
        a, b_ = jnp.split(x_in, 2, axis=-1)
        acts = jnp.tanh(a) * jax.nn.sigmoid(b_)
        rs = conv1d_cl(acts, p["rs"][i])
        if i < n_layers - 1:
            x = (x + rs[..., :hidden]) * x_mask
            out = out + rs[..., hidden:]
        else:
            out = out + rs
    return out * x_mask


def posterior_encoder_apply(p, y, y_lengths, cfg, key):
    po = cfg["posterior_encoder"]
    B, T, _ = y.shape
    y_mask = sequence_mask(y_lengths, T)[..., None]
    h = conv1d_cl(y, p["pre"]) * y_mask
    h = wn_apply(p["enc"], h, y_mask, po["hidden_channels"], po["kernel_size"],
                 po["dilation_rate"], po["n_layers"])
    stats = conv1d_cl(h, p["proj"]) * y_mask
    m, logs = jnp.split(stats, 2, axis=-1)
    z = (m + jax.random.normal(key, m.shape) * jnp.exp(logs)) * y_mask
    return z, m, logs, y_mask


def coupling_layer_apply(p, x, x_mask, cfg, reverse):
    fl = cfg["flow"]
    half = fl["channels"] // 2
    x0, x1 = x[..., :half], x[..., half:]
    h = conv1d_cl(x0, p["pre"]) * x_mask
    h = wn_apply(p["enc"], h, x_mask, fl["hidden_channels"], fl["kernel_size"],
                 fl["dilation_rate"], fl["n_layers"])
    m = conv1d_cl(h, p["post"]) * x_mask
    x1 = (x1 - m) * x_mask if reverse else (m + x1) * x_mask
    return jnp.concatenate([x0, x1], axis=-1)


def flow_apply(p, x, x_mask, cfg, reverse=False):
    if not reverse:
        for lp in p["layers"]:
            x = coupling_layer_apply(lp, x, x_mask, cfg, False)
            x = x[..., ::-1]                      # Flip over channel dim
    else:
        for lp in reversed(p["layers"]):
            x = x[..., ::-1]
            x = coupling_layer_apply(lp, x, x_mask, cfg, True)
    return x


def duration_predictor_apply(p, x, x_mask, cfg):
    ks = cfg["duration_predictor"]["kernel_size"]
    x = lax.stop_gradient(x)
    h = conv1d_cl(x * x_mask, p["c1"], padding=ks // 2, act="relu")
    h = layer_norm(h, p["ln1"]["g"], p["ln1"]["b"])
    h = conv1d_cl(h * x_mask, p["c2"], padding=ks // 2, act="relu")
    h = layer_norm(h, p["ln2"]["g"], p["ln2"]["b"])
    h = conv1d_small(h * x_mask, p["proj"]["w"], p["proj"]["b"])     # N=1: plain-JAX
    return h * x_mask                              # (B, T, 1)


def maximum_path(neg_cent, x_lengths, y_lengths):
    """Monotonic alignment search. neg_cent: (B, t_y, t_x) -> attn (B, t_y, t_x)."""
    B, t_y, t_x = neg_cent.shape
    NEG = -1e9
    x_idx = jnp.arange(t_x)
    v0 = jnp.where(x_idx[None, :] == 0, neg_cent[:, 0, :], NEG)

    def dp_step(prev, nc_row):
        prev_shift = jnp.concatenate(
            [jnp.full((B, 1), NEG, prev.dtype), prev[:, :-1]], axis=1)
        from_same = prev >= prev_shift
        cur = nc_row + jnp.where(from_same, prev, prev_shift)
        return cur, from_same

    _, from_same = lax.scan(dp_step, v0, jnp.moveaxis(neg_cent[:, 1:, :], 1, 0))
    from_same = jnp.concatenate([jnp.ones((1, B, t_x), bool), from_same], axis=0)

    def bt_step(x_cur, inputs):
        y, fs_row = inputs
        active = y < y_lengths                                   # (B,)
        row = jnp.logical_and(active[:, None],
                              x_idx[None, :] == x_cur[:, None]).astype(jnp.float32)
        take_same = jnp.take_along_axis(fs_row, x_cur[:, None], axis=1)[:, 0]
        move = jnp.logical_and(jnp.logical_and(active, y > 0),
                               jnp.logical_not(take_same))
        return jnp.where(move, x_cur - 1, x_cur), row

    ys = jnp.arange(t_y - 1, -1, -1)
    _, rows = lax.scan(bt_step, (x_lengths - 1).astype(jnp.int32),
                       (ys, from_same[::-1]))
    return jnp.moveaxis(rows[::-1], 0, 1)                        # (B, t_y, t_x)


def forward_mas(z_p, m_p, logs_p, x_lengths, y_lengths):
    # channels-last: z_p (B,t_y,C); m_p/logs_p (B,t_x,C)
    s_p_sq_r = jnp.exp(-2.0 * logs_p)
    neg1 = jnp.sum(-0.5 * math.log(2 * math.pi) - logs_p, axis=-1)          # (B,t_x)
    neg2 = jnp.einsum("byc,bxc->byx", -0.5 * z_p ** 2, s_p_sq_r)
    neg3 = jnp.einsum("byc,bxc->byx", z_p, m_p * s_p_sq_r)
    neg4 = jnp.sum(-0.5 * m_p ** 2 * s_p_sq_r, axis=-1)                     # (B,t_x)
    neg_cent = neg1[:, None, :] + neg2 + neg3 + neg4[:, None, :]
    attn = maximum_path(neg_cent, x_lengths, y_lengths)
    return attn.sum(axis=1), attn                                           # gt_dur (B,t_x)


def swish_block_apply(p, S, E, Vc):
    # tiny (dim 4/2) linears: plain-JAX / VPU path, no MXU padding waste
    B, mel, t_x = S.shape
    Vexp = jnp.broadcast_to(Vc[:, None, :, :], (B, mel, t_x, Vc.shape[-1]))
    feat = jnp.concatenate([S[..., None], E[..., None], Vexp], axis=-1)
    h = linear_small(feat, p["l1"]["w"], p["l1"]["b"], act="silu")
    return linear_small(h, p["l2"]["w"], p["l2"]["b"], act="silu")


def learnable_upsampling_apply(p, duration, V, src_mask, cfg, max_mel_len):
    lu = cfg["learnable_upsampling"]
    B, t_x, d_model = V.shape
    width = max_mel_len                                  # static bound -> jit-able
    limit = min(width, lu["max_seq_len"])
    mel_len = jnp.clip(jnp.round(duration.sum(-1)).astype(jnp.int32), 0, limit)
    mel_mask = jnp.arange(width)[None, :] >= mel_len[:, None]              # True = pad
    src_mask_ = jnp.broadcast_to(src_mask[:, None, :], (B, width, t_x))
    mel_mask_ = jnp.broadcast_to(mel_mask[:, :, None], (B, width, t_x))
    attn_mask = jnp.logical_or(src_mask_, mel_mask_)

    e_k = jnp.cumsum(duration, axis=1)
    s_k = e_k - duration
    e_k = jnp.broadcast_to(e_k[:, None, :], (B, width, t_x))
    s_k = jnp.broadcast_to(s_k[:, None, :], (B, width, t_x))
    t_ar = jnp.broadcast_to(
        jnp.arange(1, width + 1, dtype=duration.dtype)[None, :, None],
        (B, width, t_x))
    S = jnp.where(attn_mask, 0.0, t_ar - s_k)
    E = jnp.where(attn_mask, 0.0, e_k - t_ar)

    pad = (lu["kernel_size"] - 1) // 2
    cw = conv1d_cl(V, p["conv_w"], padding=pad, act="silu")
    cc = conv1d_cl(V, p["conv_c"], padding=pad, act="silu")

    W = swish_block_apply(p["swish_w"], S, E, cw)                  # (B,mel,t_x,dim_w)
    W = jnp.where(src_mask_[..., None], -1e9, W)
    W = jax.nn.softmax(W, axis=2)
    W = jnp.where(mel_mask_[..., None], 0.0, W)
    Wp = jnp.transpose(W, (0, 3, 1, 2))                            # (B,dim_w,mel,t_x)

    C = swish_block_apply(p["swish_c"], S, E, cc)                  # (B,mel,t_x,dim_c)
    t1 = jnp.einsum("bqtk,bkh->bqth", Wp, V)
    t1 = jnp.transpose(t1, (0, 2, 1, 3)).reshape(B, width, lu["dim_w"] * d_model)
    t2 = jnp.einsum("bqtk,btkp->bqtp", Wp, C)
    t2 = jnp.transpose(t2, (0, 2, 1, 3)).reshape(B, width, lu["dim_w"] * lu["dim_c"])
    up = (linear_packed(t1, p["linear_w"]) +
          linear_small(t2, p["linear_einsum"]["w"], p["linear_einsum"]["b"]))
    up = layer_norm(up, p["ln"]["g"], p["ln"]["b"])
    up = jnp.where(mel_mask[..., None], 0.0, up)
    up = linear_packed(up, p["proj_o"])
    return up, mel_mask, mel_len, Wp


def resblock2_apply(p, x, k, dilations):
    for conv_p, d in zip(p["convs"], dilations):
        xt = leaky_relu(x, LRELU_SLOPE)
        xt = conv1d_cl(xt, conv_p, padding=(k * d - d) // 2, dilation=d)
        x = xt + x
    return x


def generator_apply(p, x, dec_cfg):
    nk = len(dec_cfg["resblock_kernel_sizes"])
    h = conv1d_cl(x, p["pre"], padding=3)
    for i, (u, k) in enumerate(zip(dec_cfg["upsample_rates"],
                                   dec_cfg["upsample_kernel_sizes"])):
        h = leaky_relu(h, LRELU_SLOPE)
        h = conv_transpose1d_cl(h, p["ups"][i], kernel_size=k, stride=u, padding=(k - u) // 2)
        xs = None
        for j in range(nk):
            r = resblock2_apply(p["res"][i * nk + j], h,
                                dec_cfg["resblock_kernel_sizes"][j],
                                dec_cfg["resblock_dilation_sizes"][j])
            xs = r if xs is None else xs + r
        h = xs / nk
    h = leaky_relu(h, 0.01)                       # F.leaky_relu default slope
    h = jnp.tanh(conv1d_small(h, p["post"]["w"], None, padding=3))   # N=1 head off MXU
    return h                                       # (B, T_audio, 1)


def rand_slice_segments_cl(x, lengths, segment_size, key):
    B, T, D = x.shape
    ids_max = jnp.maximum(lengths - segment_size + 1, 1).astype(jnp.float32)
    ids = (jax.random.uniform(key, (B,)) * ids_max).astype(jnp.int32)
    segs = jnp.stack([lax.dynamic_slice(x[i], (ids[i], 0), (segment_size, D))
                      for i in range(B)])
    return segs, ids


# --------------------------------------------------------------------------
# SynthesizerTrn.forward (whole graph under one jax.jit)
# --------------------------------------------------------------------------
@functools.partial(jax.jit, static_argnames=("use_gt_duration", "max_mel_len"))
def synthesizer_forward(params, rng, x_ids, x_lengths, y, y_lengths,
                        use_gt_duration=True, max_mel_len=None):
    cfg = HPS
    if max_mel_len is None:
        max_mel_len = y.shape[-1]          # static bound: gt durations sum to <= t_y
    k1, k2, k3, k4 = jax.random.split(rng, 4)
    y_cl = jnp.transpose(y, (0, 2, 1))                                  # (B,T,C)

    hx, m_p, logs_p, x_mask = text_encoder_apply(params["enc_p"], x_ids, x_lengths, cfg)
    z, m_q, logs_q, y_mask = posterior_encoder_apply(params["enc_q"], y_cl, y_lengths, cfg, k1)
    z_p = flow_apply(params["flow"], z, y_mask, cfg, reverse=False)

    logw = duration_predictor_apply(params["dp"], hx, x_mask, cfg)      # (B,T,1)
    w = jnp.exp(logw) * x_mask
    w_, attn = forward_mas(z_p, m_p, logs_p, x_lengths, y_lengths)      # (B,t_x)
    logw_ = jnp.log(w_[..., None] + 1e-6) * x_mask
    l_length = jnp.sum((logw - logw_) ** 2, axis=(1, 2)) / jnp.sum(x_mask)
    d = w_ if use_gt_duration else w[..., 0]

    src_mask = x_mask[..., 0] == 0                                      # True = pad
    upsampled, mel_mask, mel_len, W = learnable_upsampling_apply(
        params["lu"], d, hx, src_mask, cfg, max_mel_len)
    p_mask = jnp.logical_not(mel_mask)                                  # True = valid
    m_p2, logs_p2 = jnp.split(upsampled, 2, axis=-1)                    # (B,t_mel,192)

    z_slice, ids_slice = rand_slice_segments_cl(z, y_lengths, cfg["segment_size"], k2)
    o = generator_apply(params["dec"], z_slice, cfg["decoder"])

    eps = jax.random.normal(k3, m_p2.shape)
    z_q = flow_apply(params["flow"], m_p2 + eps * jnp.exp(logs_p2),
                     p_mask[..., None].astype(jnp.float32), cfg, reverse=True)
    z_q_lengths = p_mask.sum(-1).astype(jnp.int32)
    z_slice_q, ids_slice_q = rand_slice_segments_cl(
        z_q, jnp.minimum(z_q_lengths, y_lengths), cfg["segment_size"], k4)
    o2 = generator_apply(params["dec"], z_slice_q, cfg["decoder"])

    nct = lambda t: jnp.transpose(t, (0, 2, 1))                         # back to (B,C,T)
    return (nct(o), l_length, ids_slice, nct(x_mask), nct(y_mask),
            (nct(z), nct(z_p), nct(m_p2), nct(logs_p2), nct(m_q), nct(logs_q), p_mask),
            W, nct(o2), nct(z_q), d, ids_slice_q)


# --------------------------------------------------------------------------
if __name__ == "__main__":
    root = jax.random.PRNGKey(0)
    pkey, dkey, xkey, ykey, ck1, ck2, ck3, ck4 = jax.random.split(root, 8)

    def _q(a):   # quantize to bf16-representable values so refs match exactly
        return a.astype(jnp.bfloat16).astype(jnp.float32)

    # --- self-check 1: fused matmul+bias kernel vs XLA reference --------------
    M, K, N = 37, 200, 131
    xs = _q(jax.random.normal(ck1, (M, K), jnp.float32))
    w_raw = _q(jax.random.normal(ck2, (N, K), jnp.float32) * 0.05)
    b_raw = jax.random.normal(ck3, (N,), jnp.float32) * 0.1
    got = linear_packed(xs, pack_matmul(w_raw, b_raw))
    ref = xs @ w_raw.T + b_raw[None, :]
    err = float(jnp.max(jnp.abs(got - ref))) / (float(jnp.max(jnp.abs(ref))) + 1e-6)
    assert err < 1e-3, f"pallas matmul mismatch, rel err = {err}"

    # --- self-check 2: tap-loop conv kernel vs plain-JAX reference ------------
    Bc, Tc, Cin, Cout, Kk, dil = 2, 12, 48, 40, 3, 2
    xc = _q(jax.random.normal(ck4, (Bc, Tc, Cin), jnp.float32))
    wc = _q(jax.random.normal(ck1, (Cout, Cin, Kk), jnp.float32) * 0.1)
    bc = jax.random.normal(ck2, (Cout,), jnp.float32) * 0.1
    padc = (Kk * dil - dil) // 2
    got_c = conv1d_cl(xc, pack_conv(wc, bc), padding=padc, dilation=dil)
    ref_c = conv1d_small(xc, wc, bc, padding=padc, dilation=dil)
    err_c = float(jnp.max(jnp.abs(got_c - ref_c))) / (float(jnp.max(jnp.abs(ref_c))) + 1e-6)
    assert err_c < 1e-3, f"pallas conv mismatch, rel err = {err_c}"

    # --- self-check 3: polyphase ConvTranspose vs zero-stuffed reference ------
    s, Kt, pt = 2, 4, 1
    Cin2, Cout2, T2 = 32, 24, 6
    xt = _q(jax.random.normal(ck3, (2, T2, Cin2), jnp.float32))
    wt = _q(jax.random.normal(ck4, (Cin2, Cout2, Kt), jnp.float32) * 0.1)
    bt = jax.random.normal(ck1, (Cout2,), jnp.float32) * 0.1
    got_t = conv_transpose1d_cl(xt, pack_conv_transpose(wt, bt, s, pt),
                                kernel_size=Kt, stride=s, padding=pt)
    xz = jnp.zeros((2, (T2 - 1) * s + 1, Cin2), jnp.float32).at[:, ::s, :].set(xt)
    w_conv = jnp.transpose(wt[:, :, ::-1], (1, 0, 2))
    ref_t = conv1d_small(xz, w_conv, bt, padding=Kt - 1 - pt)
    err_t = float(jnp.max(jnp.abs(got_t - ref_t))) / (float(jnp.max(jnp.abs(ref_t))) + 1e-6)
    assert err_t < 1e-3, f"polyphase conv-transpose mismatch, rel err = {err_t}"

    # --- full SynthesizerTrn forward ------------------------------------------
    params = init_params(pkey)
    B, t_x, t_y = 2, 8, 16
    x_ids = jax.random.randint(xkey, (B, t_x), 0, HPS["n_vocab"])
    x_lengths = jnp.array([8, 6], jnp.int32)
    y = jax.random.normal(ykey, (B, HPS["spec_channels"], t_y), jnp.float32)
    y_lengths = jnp.array([16, 12], jnp.int32)

    outs = synthesizer_forward(params, dkey, x_ids, x_lengths, y, y_lengths,
                               use_gt_duration=True, max_mel_len=t_y)
    jax.block_until_ready(outs)
    print("KERNEL_OK")
</pallas_src>

<mosaic_0001>
module attributes {stable_mosaic.version = 11 : i64} {
  func.func @_mm_kernel(%arg0: i32, %arg1: memref<40x200xbf16, #tpu.memory_space<vmem>>, %arg2: memref<200x256xbf16, #tpu.memory_space<vmem>>, %arg3: memref<1x256xf32, #tpu.memory_space<vmem>>, %arg4: memref<40x256xf32, #tpu.memory_space<vmem>>) attributes {dimension_semantics = [#tpu.dimension_semantics<parallel>], iteration_bounds = array<i64: 1>, scalar_prefetch = 0 : i64, scratch_operands = 0 : i64, tpu.core_type = #tpu.core_type<tc>, window_params = [{transform_indices = @transform_0, window_bounds = array<i64: 40, 200>}, {pipeline_mode = #tpu.pipeline_mode<synchronous>, transform_indices = @transform_1, window_bounds = array<i64: 200, 256>}, {pipeline_mode = #tpu.pipeline_mode<synchronous>, transform_indices = @transform_2, window_bounds = array<i64: 1, 256>}, {transform_indices = @transform_3, window_bounds = array<i64: 40, 256>}]} {
    %c0 = arith.constant 0 : index
    %c0_0 = arith.constant 0 : index
    %0 = vector.load %arg1[%c0, %c0_0] : memref<40x200xbf16, #tpu.memory_space<vmem>>, vector<40x200xbf16>
    %c0_1 = arith.constant 0 : index
    %c0_2 = arith.constant 0 : index
    %1 = vector.load %arg2[%c0_1, %c0_2] : memref<200x256xbf16, #tpu.memory_space<vmem>>, vector<200x256xbf16>
    %cst = arith.constant dense<0.000000e+00> : vector<40x256xf32>
    %2 = tpu.matmul %0, %1, %cst {dimension_numbers = #tpu.dot_dimension_numbers<[1], [0], [0], [1], [0, 0, 1, 1], [], []>} : vector<40x200xbf16>, vector<200x256xbf16>, vector<40x256xf32> -> vector<40x256xf32>
    %c0_3 = arith.constant 0 : index
    %c0_4 = arith.constant 0 : index
    %3 = vector.load %arg3[%c0_3, %c0_4] : memref<1x256xf32, #tpu.memory_space<vmem>>, vector<1x256xf32>
    %4 = vector.broadcast %3 : vector<1x256xf32> to vector<40x256xf32>
    %5 = arith.addf %2, %4 : vector<40x256xf32>
    %c0_5 = arith.constant 0 : index
    %c0_6 = arith.constant 0 : index
    %6 = vector.load %arg4[%c0_5, %c0_6] : memref<40x256xf32, #tpu.memory_space<vmem>>, vector<40x256xf32>
    tpu.vector_store %arg4[%c0_5, %c0_6], %5 {strides = array<i32>} : memref<40x256xf32, #tpu.memory_space<vmem>>, vector<40x256xf32>,
    return
  }
  func.func @transform_0(%arg0: i32) -> (i32, i32) {
    %c0_i32 = arith.constant 0 : i32
    %c0_i32_0 = arith.constant 0 : i32
    return %arg0, %c0_i32 : i32, i32
  }
  func.func @transform_1(%arg0: i32) -> (i32, i32) {
    %c0_i32 = arith.constant 0 : i32
    %c0_i32_0 = arith.constant 0 : i32
    %c0_i32_1 = arith.constant 0 : i32
    return %c0_i32, %c0_i32_0 : i32, i32
  }
  func.func @transform_2(%arg0: i32) -> (i32, i32) {
    %c0_i32 = arith.constant 0 : i32
    %c0_i32_0 = arith.constant 0 : i32
    %c0_i32_1 = arith.constant 0 : i32
    return %c0_i32, %c0_i32_0 : i32, i32
  }
  func.func @transform_3(%arg0: i32) -> (i32, i32) {
    %c0_i32 = arith.constant 0 : i32
    %c0_i32_0 = arith.constant 0 : i32
    return %arg0, %c0_i32 : i32, i32
  }
}

</mosaic_0001>

<bundles_post_ra>
// kernel: tpu_custom_call.1
= control target key start
LH: loop header
LB: loop body
LE: loop exit
PB: predicated region body
PF: predicated region fallthrough
CT: control target
= control target key end

     0   :  { %8 = vsyncpa [#allocation3], 0  ;;  %s687_s0 = inlined_call_operand.hbm [shape: bf16[37,200], index: 0, kind: input, shape index: {}]   ;;  %s688_s1 = inlined_call_operand.hbm [shape: bf16[200,256], index: 1, kind: input, shape index: {}]   ;;  %s689_s2 = inlined_call_operand.hbm [shape: f32[1,256], index: 2, kind: input, shape index: {}]   ;;  %s690_s3 = inlined_call_operand.hbm [shape: f32[37,256], index: 3, kind: output, shape index: {}]  }
   0x1   :  { %9 = vsyncpa [#allocation6], 0 }
   0x2   :  { %10 = vsyncpa [#allocation4], 0  ;;  %s28_s14 = sshll.u32 %s688_s1, 4  ;;  %s641_s15 = smov [#allocation5]   ;;  %s29_s14 = int_to_ptr.hbm [resolvable:$true] %s28_s14 }
   0x3   :  { %s30_s16 = sshll.u32 %s641_s15, 4  ;;  %s15_s19 = sshll.u32 %s687_s0, 4  ;;  %s31_s16 = int_to_ptr.vmem [resolvable:$true] %s30_s16  ;;  %s16_s19 = int_to_ptr.hbm [resolvable:$true] %s15_s19 }
   0x4   :  { %s642_s20 = smov 128   ;;  %s643_s21 = smov 8  }
   0x5   :  { %36 = dma.hbm_to_vmem [thread:$0]  %s29_s14, 3200, %s31_s16, [#allocation6], %s642_s20, %s642_s20, %s643_s21  }
   0x6   :  { %s644_s22 = smov [#allocation2]   ;;  %s42_s26 = sshll.u32 %s689_s2, 4  ;;  %s43_s26 = int_to_ptr.hbm [resolvable:$true] %s42_s26 }
   0x7   :  { %s17_s23 = sshll.u32 %s644_s22, 4  ;;  %s645_s1 = smov [#allocation7]   ;;  %s18_s23 = int_to_ptr.vmem [resolvable:$true] %s17_s23 }
   0x8   :  { %23 = dma.hbm_to_vmem [thread:$0]  %s16_s19, 640, %s18_s23, [#allocation3], %s642_s20, %s642_s20, %s643_s21  }
   0x9   :  { %s44_s27 = sshll.u32 %s645_s1, 4  ;;  %s45_s27 = int_to_ptr.vmem [resolvable:$true] %s44_s27 }
   0xa   :  { %47 = dma.hbm_to_vmem [thread:$0]  %s43_s26, 32, %s45_s27, [#allocation6]  }
   0xb   :  { %635 = dma.done.wait [#allocation3], 640  }
   0xc   :  { %636 = vsyncadd [#allocation3], 4294966656 }
   0xd   :  { %637 = dma.done.wait [#allocation6], 3232  }
   0xe   :  { %638 = vsyncadd [#allocation6], 4294964064  ;;  %v459_v0 = vld [vmem:[#allocation5 + $0x70] sm:$0xf]  ;;  %v522_v1 = vld [vmem:[#allocation5 + $0x74] sm:$0xf0] }
   0xf   :  { %v521_v2 = vld [vmem:[#allocation5 + $0x74] sm:$0xf]  ;;  %v460_v3 = vor.u32 %v522_v1, %v459_v0  ;;  %v461_v4 = vld [vmem:[#allocation5 + $0x78] sm:$0xf0]  ;;  %v451_v5 = vld [vmem:[#allocation5 + $0x60] sm:$0xf] }
  0x10   :  { %v520_v6 = vld [vmem:[#allocation5 + $0x64] sm:$0xf0]  ;;  %v464_v7 = vor.u32 %v521_v2, %v461_v4  ;;  %v519_v8 = vld [vmem:[#allocation5 + $0x64] sm:$0xf]  ;;  %v453_v9 = vld [vmem:[#allocation5 + $0x68] sm:$0xf0] }
  0x11   :  { %v90_v10 = vld [vmem:[#allocation5 + $0xc0] sm:$0xff]  ;;  %263 = vmatpush.bf16.msra.mxu0 %v460_v3  ;;  %v452_v11 = vor.u32 %v520_v6, %v451_v5  ;;  %vm256_vm0 = vcmask 1043456   ;;  %v456_v14 = vor.u32 %v519_v8, %v453_v9  ;;  %v443_v15 = vld [vmem:[#allocation5 + $0x50] sm:$0xf]  ;;  %v518_v16 = vld [vmem:[#allocation5 + $0x54] sm:$0xf0] }
  0x12   :  { %v195_v12 = vunpack.c.h.b16 %v90_v10  ;;  %v194_v13 = vunpack.c.l.b16 %v90_v10  ;;  %309 = vmatpush.bf16.msra.mxu2 %v464_v7  ;;  %v517_v17 = vld [vmem:[#allocation5 + $0x54] sm:$0xf]  ;;  %v445_v19 = vld [vmem:[#allocation5 + $0x58] sm:$0xf0]  ;;  %v444_v24 = vor.u32 %v518_v16, %v443_v15  ;;  %v491_v26 = vld [vmem:[#allocation5 + $0xb0] sm:$0xf] }
  0x13   :  { %v529_v20 = vld [vmem:[#allocation5 + $0xb4] sm:$0xf]  ;;  %v493_v21 = vld [vmem:[#allocation5 + $0xb8] sm:$0xf0]  ;;  %v530_v27 = vld [vmem:[#allocation5 + $0xb4] sm:$0xf0]  ;;  %v448_v28 = vor.u32 %v517_v17, %v445_v19 }
  0x14   :  { %v221_v18 = vpack.c.b16 %v195_v12, %v195_v12  ;;  %v220_v22 = vpack.c.b16 %v194_v13, %v194_v13  ;;  %v496_v29 = vor.u32 %v529_v20, %v493_v21  ;;  %v435_v30 = vld [vmem:[#allocation5 + $0x40] sm:$0xf]  ;;  %v516_v31 = vld [vmem:[#allocation5 + $0x44] sm:$0xf0]  ;;  %v515_v32 = vld [vmem:[#allocation5 + $0x44] sm:$0xf]  ;;  %v492_v36 = vor.u32 %v530_v27, %v491_v26 }
  0x15   :  { %264 = vmatpush.bf16.msra.mxu0 %v452_v11  ;;  %v437_v33 = vld [vmem:[#allocation5 + $0x48] sm:$0xf0]  ;;  %v527_v34 = vld [vmem:[#allocation5 + $0xa4] sm:$0xf]  ;;  %v483_v37 = vld [vmem:[#allocation5 + $0xa0] sm:$0xf]  ;;  %v436_v39 = vor.u32 %v516_v31, %v435_v30 }
  0x16   :  { %v261_v23 = vsel %vm256_vm0, %v221_v18, 0  ;;  %v258_v25 = vsel %vm256_vm0, %v220_v22, 0  ;;  %310 = vmatpush.bf16.msra.mxu2 %v456_v14  ;;  %v485_v35 = vld [vmem:[#allocation5 + $0xa8] sm:$0xf0]  ;;  %v528_v38 = vld [vmem:[#allocation5 + $0xa4] sm:$0xf0]  ;;  %v440_v40 = vor.u32 %v515_v32, %v437_v33 }
  0x17   :  { %335 = vmatpush.bf16.msra.mxu3 %v261_v23  ;;  %289 = vmatpush.bf16.msra.mxu1 %v258_v25  ;;  %v488_v41 = vor.u32 %v527_v34, %v485_v35  ;;  %v427_v42 = vld [vmem:[#allocation5 + $0x30] sm:$0xf]  ;;  %v514_v43 = vld [vmem:[#allocation5 + $0x34] sm:$0xf0]  ;;  %v513_v44 = vld [vmem:[#allocation5 + $0x34] sm:$0xf]  ;;  %v484_v48 = vor.u32 %v528_v38, %v483_v37 }
  0x18   :  { %v429_v45 = vld [vmem:[#allocation5 + $0x38] sm:$0xf0]  ;;  %v525_v46 = vld [vmem:[#allocation5 + $0x94] sm:$0xf]  ;;  %v475_v49 = vld [vmem:[#allocation5 + $0x90] sm:$0xf]  ;;  %v428_v51 = vor.u32 %v514_v43, %v427_v42 }
  0x19   :  { %265 = vmatpush.bf16.msra.mxu0 %v444_v24  ;;  %v477_v47 = vld [vmem:[#allocation5 + $0x98] sm:$0xf0]  ;;  %v526_v50 = vld [vmem:[#allocation5 + $0x94] sm:$0xf0]  ;;  %v432_v52 = vor.u32 %v513_v44, %v429_v45  ;;  %v419_v54 = vld [vmem:[#allocation5 + $0x20] sm:$0xf] }
  0x1a   :  { %311 = vmatpush.bf16.msra.mxu2 %v448_v28  ;;  %v480_v53 = vor.u32 %v525_v46, %v477_v47  ;;  %v512_v55 = vld [vmem:[#allocation5 + $0x24] sm:$0xf0]  ;;  %v511_v56 = vld [vmem:[#allocation5 + $0x24] sm:$0xf]  ;;  %v421_v57 = vld [vmem:[#allocation5 + $0x28] sm:$0xf0]  ;;  %v476_v60 = vor.u32 %v526_v50, %v475_v49 }
  0x1b   :  { %336 = vmatpush.bf16.msra.mxu3 %v496_v29  ;;  %290 = vmatpush.bf16.msra.mxu1 %v492_v36  ;;  %v523_v58 = vld [vmem:[#allocation5 + $0x84] sm:$0xf]  ;;  %v469_v59 = vld [vmem:[#allocation5 + $0x88] sm:$0xf0]  ;;  %v467_v61 = vld [vmem:[#allocation5 + $0x80] sm:$0xf]  ;;  %v420_v63 = vor.u32 %v512_v55, %v419_v54  ;;  %v424_v1 = vor.u32 %v511_v56, %v421_v57 }
  0x1c   :  { %v524_v62 = vld [vmem:[#allocation5 + $0x84] sm:$0xf0]  ;;  %v503_v0 = vld [vmem:[#allocation2 + $0x4] sm:$0xf]  ;;  %v472_v2 = vor.u32 %v523_v58, %v469_v59  ;;  %v389_v3 = vld [vmem:[#allocation2 + $0x8] sm:$0xf0] }
  0x1d   :  { %266 = vmatpush.bf16.msra.mxu0 %v436_v39  ;;  %v411_v4 = vld [vmem:[#allocation5 + $0x10] sm:$0xf]  ;;  %v510_v5 = vld [vmem:[#allocation5 + $0x14] sm:$0xf0]  ;;  %v509_v6 = vld [vmem:[#allocation5 + $0x14] sm:$0xf]  ;;  %v468_v8 = vor.u32 %v524_v62, %v467_v61  ;;  %v392_v9 = vor.u32 %v503_v0, %v389_v3 }
  0x1e   :  { %312 = vmatpush.bf16.msra.mxu2 %v440_v40  ;;  %v413_v7 = vld [vmem:[#allocation5 + $0x18] sm:$0xf0]  ;;  %v412_v10 = vor.u32 %v510_v5, %v411_v4  ;;  %vm246_vm1 = vcmask 588800   ;;  %v403_v12 = vld [vmem:[#allocation5] sm:$0xf]  ;;  %s646_s0 = smov [#allocation8]  }
  0x1f   :  { %337 = vmatpush.bf16.msra.mxu3 %v488_v41  ;;  %291 = vmatpush.bf16.msra.mxu1 %v484_v48  ;;  %v416_v11 = vor.u32 %v509_v6, %v413_v7  ;;  %v508_v13 = vld [vmem:[#allocation5 + $0x4] sm:$0xf0]  ;;  %v507_v14 = vld [vmem:[#allocation5 + $0x4] sm:$0xf]  ;;  %v405_v15 = vld [vmem:[#allocation5 + $0x8] sm:$0xf0] }
  0x20   :  { %v404_v16 = vor.u32 %v508_v13, %v403_v12  ;;  %v387_v17 = vld [vmem:[#allocation2] sm:$0xf]  ;;  %v504_v18 = vld [vmem:[#allocation2 + $0x4] sm:$0xf0]  ;;  %v408_v19 = vor.u32 %v507_v14, %v405_v15  ;;  %v505_v21 = vld [vmem:[#allocation2 + $0x14] sm:$0xf] }
  0x21   :  { %267 = vmatpush.bf16.msra.mxu0 %v428_v51  ;;  %v388_v20 = vor.u32 %v504_v18, %v387_v17  ;;  %v397_v22 = vld [vmem:[#allocation2 + $0x18] sm:$0xf0]  ;;  %v395_v24 = vld [vmem:[#allocation2 + $0x10] sm:$0xf]  ;;  %v506_v25 = vld [vmem:[#allocation2 + $0x14] sm:$0xf0] }
  0x22   :  { %313 = vmatpush.bf16.msra.mxu2 %v432_v52  ;;  %v400_v23 = vor.u32 %v505_v21, %v397_v22  ;;  %v396_v26 = vor.u32 %v506_v25, %v395_v24  ;;  %v65_v27 = vld [vmem:[#allocation2 + $0x20] sm:$0xff]  ;;  %v91_v33 = vld [vmem:[#allocation7] sm:$0x3]  ;;  %s369_s2 = sshll.u32 %s646_s0, 4  ;;  %s371_s30 = sshll.u32 %s690_s3, 4  ;;  %s370_s2 = int_to_ptr.vmem [resolvable:$true] %s369_s2  ;;  %s372_s30 = int_to_ptr.hbm [resolvable:$true] %s371_s30 }
  0x23   :  { %338 = vmatpush.bf16.msra.mxu3 %v480_v53  ;;  %292 = vmatpush.bf16.msra.mxu1 %v476_v60  ;;  %v111_v28 = vunpack.c.h.b16 %v65_v27  ;;  %v110_v30 = vunpack.c.l.b16 %v65_v27  ;;  %v93_v34 = vperm.slane %v91_v33, 0  ;;  %v94_v40 = vperm.slane %v91_v33, 1  ;;  %s647_s4 = smov 256   ;;  %s648_s5 = smov 16  }
  0x25   :  { %268 = vmatpush.bf16.msra.mxu0 %v420_v63  ;;  %v117_v29 = vpack.c.b16 %v111_v28, %v111_v28  ;;  %v116_v31 = vpack.c.b16 %v110_v30, %v110_v30 }
  0x26   :  { %314 = vmatpush.bf16.msra.mxu2 %v424_v1 }
  0x27   :  { %339 = vmatpush.bf16.msra.mxu3 %v472_v2  ;;  %293 = vmatpush.bf16.msra.mxu1 %v468_v8 }
  0x29   :  { %269 = vmatpush.bf16.msra.mxu0 %v412_v10 }
  0x2a   :  { %500 = vmatmul.msk.bf16.vlgmr.msra.gmra.mxu3 %vm246_vm1, %v392_v9  ;;  %315 = vmatpush.bf16.msra.mxu2 %v416_v11 }
  0x2b   :  { %497 = vmatmul.msk.bf16.vlgmr.msra.gmra.mxu1 %vm246_vm1, %v392_v9 }
  0x2d   :  { %270 = vmatpush.bf16.msra.mxu0 %v404_v16 }
  0x2e   :  { %316 = vmatpush.bf16.msra.mxu2 %v408_v19 }
  0x30   :  { %271 = vmatmul.bf16.vlgmr.msra.gmra.mxu0 %v388_v20 }
  0x31   :  { %317 = vmatmul.bf16.vlgmr.msra.gmra.mxu2 %v388_v20 }
  0x3a   :  { %501 = vmatmul.msk.bf16.gmra.mxu3 %vm246_vm1, %v400_v23 }
  0x3b   :  { %498 = vmatmul.msk.bf16.gmra.mxu1 %vm246_vm1, %v400_v23 }
  0x40   :  { %276 = vmatmul.bf16.gmra.mxu0 %v396_v26 }
  0x41   :  { %322 = vmatmul.bf16.gmra.mxu2 %v396_v26 }
  0x4a   :  { %502 = vmatmul.msk.bf16.gmra.mxu3 %vm246_vm1, %v117_v29 }
  0x4b   :  { %499 = vmatmul.msk.bf16.gmra.mxu1 %vm246_vm1, %v117_v29 }
  0x50   :  { %281 = vmatmul.bf16.gmra.mxu0 %v116_v31 }
  0x51   :  { %327 = vmatmul.bf16.gmra.mxu2 %v116_v31 }
  0xa8   :  { %v295_v32 = vpop.f32.mrf.mxu1 }
  0xad   :  { %v341_v35 = vpop.f32.mrf.mxu3  ;;  %v272_v36 = vpop.f32.mrf.mxu0 }
  0xae   :  { %v273_v37 = vadd.f32 %v272_v36, %v93_v34 }
  0xb0   :  { %v297_v38 = vpop.f32.mrf.mxu1  ;;  %v296_v39 = vadd.f32 %v295_v32, %v273_v37 }
  0xb2   :  { %355 = vst [vmem:[#allocation8] sm:$0xff] %v296_v39 }
  0xb4   :  { %v318_v41 = vpop.f32.mrf.mxu2 }
  0xb5   :  { %v343_v42 = vpop.f32.mrf.mxu3  ;;  %v319_v43 = vadd.f32 %v318_v41, %v94_v40  ;;  %v274_v44 = vpop.f32.mrf.mxu0 }
  0xb6   :  { %v275_v45 = vadd.f32 %v274_v44, %v93_v34 }
  0xb7   :  { %v342_v46 = vadd.f32 %v341_v35, %v319_v43 }
  0xb8   :  { %v300_v47 = vpop.f32.mrf.mxu1  ;;  %v298_v48 = vadd.f32 %v297_v38, %v275_v45 }
  0xb9   :  { %356 = vst [vmem:[#allocation8 + $0x8] sm:$0xff] %v342_v46 }
  0xba   :  { %357 = vst [vmem:[#allocation8 + $0x10] sm:$0xff] %v298_v48 }
  0xbc   :  { %v320_v49 = vpop.f32.mrf.mxu2 }
  0xbd   :  { %v346_v50 = vpop.f32.mrf.mxu3  ;;  %v321_v51 = vadd.f32 %v320_v49, %v94_v40  ;;  %v277_v52 = vpop.f32.mrf.mxu0 }
  0xbe   :  { %v278_v53 = vadd.f32 %v277_v52, %v93_v34 }
  0xbf   :  { %v344_v54 = vadd.f32 %v343_v42, %v321_v51 }
  0xc0   :  { %v302_v55 = vpop.f32.mrf.mxu1  ;;  %v301_v56 = vadd.f32 %v300_v47, %v278_v53 }
  0xc1   :  { %358 = vst [vmem:[#allocation8 + $0x18] sm:$0xff] %v344_v54 }
  0xc2   :  { %359 = vst [vmem:[#allocation8 + $0x20] sm:$0xff] %v301_v56 }
  0xc4   :  { %v323_v57 = vpop.f32.mrf.mxu2 }
  0xc5   :  { %v348_v58 = vpop.f32.mrf.mxu3  ;;  %v324_v59 = vadd.f32 %v323_v57, %v94_v40  ;;  %v279_v60 = vpop.f32.mrf.mxu0 }
  0xc6   :  { %v280_v61 = vadd.f32 %v279_v60, %v93_v34 }
  0xc7   :  { %v347_v62 = vadd.f32 %v346_v50, %v324_v59 }
  0xc8   :  { %v305_v63 = vpop.f32.mrf.mxu1  ;;  %v303_v0 = vadd.f32 %v302_v55, %v280_v61 }
  0xc9   :  { %360 = vst [vmem:[#allocation8 + $0x28] sm:$0xff] %v347_v62 }
  0xca   :  { %361 = vst [vmem:[#allocation8 + $0x30] sm:$0xff] %v303_v0 }
  0xcc   :  { %v325_v1 = vpop.f32.mrf.mxu2 }
  0xcd   :  { %v351_v2 = vpop.f32.mrf.mxu3  ;;  %v326_v3 = vadd.f32 %v325_v1, %v94_v40  ;;  %v282_v4 = vpop.f32.mrf.mxu0 }
  0xce   :  { %v283_v5 = vadd.f32 %v282_v4, %v93_v34 }
  0xcf   :  { %v349_v6 = vadd.f32 %v348_v58, %v326_v3 }
  0xd0   :  { %v307_v7 = vpop.f32.mrf.mxu1  ;;  %v306_v8 = vadd.f32 %v305_v63, %v283_v5 }
  0xd1   :  { %362 = vst [vmem:[#allocation8 + $0x38] sm:$0xff] %v349_v6 }
  0xd2   :  { %363 = vst [vmem:[#allocation8 + $0x40] sm:$0xff] %v306_v8 }
  0xd4   :  { %v328_v9 = vpop.f32.mrf.mxu2 }
  0xd5   :  { %v353_v10 = vpop.f32.mrf.mxu3  ;;  %v329_v11 = vadd.f32 %v328_v9, %v94_v40  ;;  %v284_v12 = vpop.f32.mrf.mxu0 }
  0xd7   :  { %v352_v13 = vadd.f32 %v351_v2, %v329_v11 }
  0xd9   :  { %364 = vst [vmem:[#allocation8 + $0x48] sm:$0xff] %v352_v13 }
  0xda   :  { %377 = dma.vmem_to_hbm [thread:$0]  %s370_s2, 1280, %s372_s30, [#allocation4], %s647_s4, %s647_s4, %s648_s5  }
  0xdc   :  { %v330_v14 = vpop.f32.mrf.mxu2 }
  0xdd   :  { %639 = dma.done.wait [#allocation4], 1280  }
  0xde   :  { %640 = vsyncadd [#allocation4], 4294966016 }
  0xdf   :  { %382 = vsyncpa [#allocation3], 1 }
  0xe0   :  { %383 = vsyncpa [#allocation6], 1 }
  0xe1   :  { %384 = vsyncpa [#allocation4], 1 }

</bundles_post_ra>
